<compile_context>
chip_gen: v5e
topology: v5e:2x2
jax: 0.10.0
libtpu: 0.0.40
codegen_flags: <defaults>
</compile_context>

<pallas_src>
import numpy as np
import jax
import jax.numpy as jnp
from jax.experimental import pallas as pl
from jax.experimental.pallas import tpu as pltpu


def _round_up(x, m):
    return ((x + m - 1) // m) * m


def _make_generate_layer_kernel(identity_interp):
    def kernel(*refs):
        if identity_interp:
            (z_ref, h_ref, w1_ref, b1_ref, w2_ref, b2_ref, w3_ref, b3_ref,
             g_ref, be_ref, wh_ref, bh_ref, mean_ref, var_ref) = refs
            s_ref = None
        else:
            (z_ref, h_ref, w1_ref, b1_ref, w2_ref, b2_ref, w3_ref, b3_ref,
             g_ref, be_ref, s_ref, wh_ref, bh_ref, mean_ref, var_ref) = refs

        # --- MLP: Linear -> ReLU -> Linear -> ReLU -> Linear -> LayerNorm -> ReLU ---
        z = z_ref[...]
        a1 = jnp.maximum(
            jnp.dot(z, w1_ref[...], preferred_element_type=jnp.float32) + b1_ref[...], 0.0)
        a2 = jnp.maximum(
            jnp.dot(a1, w2_ref[...], preferred_element_type=jnp.float32) + b2_ref[...], 0.0)
        a3 = jnp.dot(a2, w3_ref[...], preferred_element_type=jnp.float32) + b3_ref[...]

        # LayerNorm(in_dim), eps=1e-5, biased variance (PyTorch semantics).
        # NOTE: in_dim is NOT padded, so mean/var divide by the true feature count.
        mu = jnp.mean(a3, axis=-1, keepdims=True)
        var = jnp.mean((a3 - mu) ** 2, axis=-1, keepdims=True)
        ln = (a3 - mu) * jax.lax.rsqrt(var + 1e-5) * g_ref[...] + be_ref[...]
        r = jnp.maximum(ln, 0.0)

        # nearest interpolation along the feature dim. For the default hin_dim == in_dim
        # case it is the identity -> no op; otherwise a tiny one-hot selection matmul.
        if identity_interp:
            zi = r
        else:
            zi = jnp.dot(r, s_ref[...], preferred_element_type=jnp.float32)

        # add permuted h, then one fused head matmul producing [mean | var_pre], each half
        # padded to a multiple of 128 lanes so output stores are unmasked.
        s = zi + h_ref[...]
        heads = jnp.dot(s, wh_ref[...], preferred_element_type=jnp.float32) + bh_ref[...]
        zp = mean_ref.shape[-1]
        mean_ref[...] = heads[:, :zp]
        pre = heads[:, zp:]
        # Softplus with PyTorch defaults (beta=1, threshold=20)
        var_ref[...] = jnp.where(pre > 20.0, pre,
                                 jnp.log1p(jnp.exp(jnp.minimum(pre, 20.0))))

    return kernel


def init_params(key, in_dim=7, hin_dim=7, latent_dim=48, z_dim=96):
    """Deterministic synthetic parameters (module __init__ shapes)."""
    ks = jax.random.split(key, 10)
    L2 = latent_dim * 2

    def lin(k, fan_in, fan_out):
        kw, kb = jax.random.split(k)
        bound = 1.0 / np.sqrt(fan_in)
        w = jax.random.uniform(kw, (fan_in, fan_out), jnp.float32, -bound, bound)
        b = jax.random.uniform(kb, (1, fan_out), jnp.float32, -bound, bound)
        return w, b

    w1, b1 = lin(ks[0], in_dim, L2)
    w2, b2 = lin(ks[1], L2, L2)
    w3, b3 = lin(ks[2], L2, in_dim)
    gamma = jnp.ones((1, in_dim), jnp.float32)
    beta = jnp.zeros((1, in_dim), jnp.float32)
    wm, bm = lin(ks[3], hin_dim, z_dim)
    wv, bv = lin(ks[4], hin_dim, z_dim)
    return dict(w1=w1, b1=b1, w2=w2, b2=b2, w3=w3, b3=b3,
                gamma=gamma, beta=beta, wm=wm, bm=bm, wv=wv, bv=bv)


def generate_layer_forward(z, h, params, *, tm=1024):
    """Pallas implementation of generate_Layer.forward(z, h).

    z: (B, T, in_dim) float32
    h: (B, hin_dim, T) float32
    returns (z_prior_mean (B,T,z_dim), z_prior_var (B,T,z_dim), h)

    tm: requested row tile.  VMEM footprint per step is ~2*zp*4*tm bytes per output
    (double-buffered), so even tm=4096 with zp=128 stays far below the scoped VMEM
    limits on v5e (16 MiB), v6e (32 MiB) and v7x (32/64 MiB).
    """
    B, T, in_dim = z.shape
    _, hin_dim, Th = h.shape
    assert Th == T, "h last dim must match z sequence length"
    z_dim = params["wm"].shape[1]
    L2 = params["w1"].shape[1]

    # h.permute(0, 2, 1), flatten rows
    h_temp = jnp.transpose(h, (0, 2, 1)).reshape(B * T, hin_dim)
    z2 = z.reshape(B * T, in_dim)

    # F.interpolate(..., scale_factor=hin_dim/in_dim, mode='nearest') on the feature dim.
    scale = hin_dim / in_dim
    out_size = int(np.floor(in_dim * scale))
    assert out_size == hin_dim, "interpolated width must match hin_dim for the add"
    dst = np.arange(out_size)
    src = np.minimum(np.floor(dst * in_dim / out_size).astype(np.int64), in_dim - 1)
    identity_interp = (out_size == in_dim) and bool(np.all(src == dst))

    # Row-tile selection: as big as requested, but keep >= 2 grid steps when possible
    # (the "parallel" grid axis is what gets sharded across v7x's two TensorCores),
    # and always a multiple of 8 sublanes.
    N = B * T
    if N > 8:
        tm_eff = min(_round_up(tm, 8), _round_up((N + 1) // 2, 8))
    else:
        tm_eff = 8
    N_pad = _round_up(N, tm_eff)
    if N_pad != N:
        z2 = jnp.pad(z2, ((0, N_pad - N), (0, 0)))
        h_temp = jnp.pad(h_temp, ((0, N_pad - N), (0, 0)))

    # Fused heads [mean | var], each zero-padded to a multiple of 128 output lanes.
    zp = _round_up(z_dim, 128)

    def pad_cols(w):
        return jnp.pad(w, ((0, 0), (0, zp - w.shape[1])))

    w_heads = jnp.concatenate([pad_cols(params["wm"]), pad_cols(params["wv"])], axis=1)
    b_heads = jnp.concatenate([pad_cols(params["bm"]), pad_cols(params["bv"])], axis=1)

    full = lambda shape: pl.BlockSpec(shape, lambda i: (0, 0))
    row = lambda d: pl.BlockSpec((tm_eff, d), lambda i: (i, 0))

    in_specs = [
        row(in_dim),                              # z rows
        row(hin_dim),                             # h_temp rows
        full((in_dim, L2)), full((1, L2)),        # MLP linear 1
        full((L2, L2)), full((1, L2)),            # MLP linear 2
        full((L2, in_dim)), full((1, in_dim)),    # MLP linear 3
        full((1, in_dim)), full((1, in_dim)),     # LayerNorm gamma/beta
    ]
    operands = [z2, h_temp,
                params["w1"], params["b1"], params["w2"], params["b2"],
                params["w3"], params["b3"], params["gamma"], params["beta"]]
    if not identity_interp:
        S = np.zeros((in_dim, out_size), np.float32)
        S[src, dst] = 1.0
        in_specs.append(full((in_dim, out_size)))  # nearest-interp selection
        operands.append(jnp.asarray(S))
    in_specs += [full((hin_dim, 2 * zp)), full((1, 2 * zp))]   # fused heads W, b
    operands += [w_heads, b_heads]

    grid = (N_pad // tm_eff,)
    mean_flat, var_flat = pl.pallas_call(
        _make_generate_layer_kernel(identity_interp),
        out_shape=(jax.ShapeDtypeStruct((N_pad, zp), jnp.float32),
                   jax.ShapeDtypeStruct((N_pad, zp), jnp.float32)),
        grid_spec=pltpu.PrefetchScalarGridSpec(
            num_scalar_prefetch=0,
            grid=grid,
            in_specs=in_specs,
            out_specs=[pl.BlockSpec((tm_eff, zp), lambda i: (i, 0)),
                       pl.BlockSpec((tm_eff, zp), lambda i: (i, 0))],
        ),
        compiler_params=pltpu.CompilerParams(
            dimension_semantics=("parallel",)),
    )(*operands)

    z_prior_mean = mean_flat[:N, :z_dim].reshape(B, T, z_dim)
    z_prior_var = var_flat[:N, :z_dim].reshape(B, T, z_dim)
    return z_prior_mean, z_prior_var, h


if __name__ == "__main__":
    # module defaults: z_dim=96, latent_dim=48, in_dim=7, hin_dim=7; small B, T
    B, T = 2, 8
    in_dim, hin_dim, latent_dim, z_dim = 7, 7, 48, 96

    key = jax.random.PRNGKey(0)
    kz, kh, kp = jax.random.split(key, 3)
    z = jax.random.normal(kz, (B, T, in_dim), jnp.float32)
    h = jax.random.normal(kh, (B, hin_dim, T), jnp.float32)
    params = init_params(kp, in_dim, hin_dim, latent_dim, z_dim)

    z_prior_mean, z_prior_var, h_out = generate_layer_forward(z, h, params)
    jax.block_until_ready((z_prior_mean, z_prior_var, h_out))

    assert z_prior_mean.shape == (B, T, z_dim)
    assert z_prior_var.shape == (B, T, z_dim)
    assert bool(jnp.all(z_prior_var > 0.0))
    assert h_out.shape == h.shape
    print("KERNEL_OK")
</pallas_src>

<mosaic_0001>
module attributes {stable_mosaic.version = 11 : i64} {
  func.func @kernel(%arg0: i32, %arg1: memref<8x7xf32, #tpu.memory_space<vmem>>, %arg2: memref<8x7xf32, #tpu.memory_space<vmem>>, %arg3: memref<7x96xf32, #tpu.memory_space<vmem>>, %arg4: memref<1x96xf32, #tpu.memory_space<vmem>>, %arg5: memref<96x96xf32, #tpu.memory_space<vmem>>, %arg6: memref<1x96xf32, #tpu.memory_space<vmem>>, %arg7: memref<96x7xf32, #tpu.memory_space<vmem>>, %arg8: memref<1x7xf32, #tpu.memory_space<vmem>>, %arg9: memref<1x7xf32, #tpu.memory_space<vmem>>, %arg10: memref<1x7xf32, #tpu.memory_space<vmem>>, %arg11: memref<7x256xf32, #tpu.memory_space<vmem>>, %arg12: memref<1x256xf32, #tpu.memory_space<vmem>>, %arg13: memref<8x128xf32, #tpu.memory_space<vmem>>, %arg14: memref<8x128xf32, #tpu.memory_space<vmem>>) attributes {dimension_semantics = [#tpu.dimension_semantics<parallel>], iteration_bounds = array<i64: 2>, scalar_prefetch = 0 : i64, scratch_operands = 0 : i64, tpu.core_type = #tpu.core_type<tc>, window_params = [{transform_indices = @transform_0, window_bounds = array<i64: 8, 7>}, {transform_indices = @transform_1, window_bounds = array<i64: 8, 7>}, {pipeline_mode = #tpu.pipeline_mode<synchronous>, transform_indices = @transform_2, window_bounds = array<i64: 7, 96>}, {pipeline_mode = #tpu.pipeline_mode<synchronous>, transform_indices = @transform_3, window_bounds = array<i64: 1, 96>}, {pipeline_mode = #tpu.pipeline_mode<synchronous>, transform_indices = @transform_4, window_bounds = array<i64: 96, 96>}, {pipeline_mode = #tpu.pipeline_mode<synchronous>, transform_indices = @transform_5, window_bounds = array<i64: 1, 96>}, {pipeline_mode = #tpu.pipeline_mode<synchronous>, transform_indices = @transform_6, window_bounds = array<i64: 96, 7>}, {pipeline_mode = #tpu.pipeline_mode<synchronous>, transform_indices = @transform_7, window_bounds = array<i64: 1, 7>}, {pipeline_mode = #tpu.pipeline_mode<synchronous>, transform_indices = @transform_8, window_bounds = array<i64: 1, 7>}, {pipeline_mode = #tpu.pipeline_mode<synchronous>, transform_indices = @transform_9, window_bounds = array<i64: 1, 7>}, {pipeline_mode = #tpu.pipeline_mode<synchronous>, transform_indices = @transform_10, window_bounds = array<i64: 7, 256>}, {pipeline_mode = #tpu.pipeline_mode<synchronous>, transform_indices = @transform_11, window_bounds = array<i64: 1, 256>}, {transform_indices = @transform_12, window_bounds = array<i64: 8, 128>}, {transform_indices = @transform_13, window_bounds = array<i64: 8, 128>}]} {
    %c0 = arith.constant 0 : index
    %c0_0 = arith.constant 0 : index
    %0 = vector.load %arg1[%c0, %c0_0] : memref<8x7xf32, #tpu.memory_space<vmem>>, vector<8x7xf32>
    %c0_1 = arith.constant 0 : index
    %c0_2 = arith.constant 0 : index
    %1 = vector.load %arg3[%c0_1, %c0_2] : memref<7x96xf32, #tpu.memory_space<vmem>>, vector<7x96xf32>
    %cst = arith.constant dense<0.000000e+00> : vector<8x96xf32>
    %2 = tpu.matmul %0, %1, %cst {dimension_numbers = #tpu.dot_dimension_numbers<[1], [0], [0], [1], [0, 0, 1, 1], [], []>} : vector<8x7xf32>, vector<7x96xf32>, vector<8x96xf32> -> vector<8x96xf32>
    %c0_3 = arith.constant 0 : index
    %c0_4 = arith.constant 0 : index
    %3 = vector.load %arg4[%c0_3, %c0_4] : memref<1x96xf32, #tpu.memory_space<vmem>>, vector<1x96xf32>
    %4 = vector.broadcast %3 : vector<1x96xf32> to vector<8x96xf32>
    %5 = arith.addf %2, %4 : vector<8x96xf32>
    %cst_5 = arith.constant 0.000000e+00 : f32
    %6 = vector.broadcast %cst_5 : f32 to vector<8x96xf32>
    %7 = arith.maximumf %5, %6 : vector<8x96xf32>
    %c0_6 = arith.constant 0 : index
    %c0_7 = arith.constant 0 : index
    %8 = vector.load %arg5[%c0_6, %c0_7] : memref<96x96xf32, #tpu.memory_space<vmem>>, vector<96x96xf32>
    %cst_8 = arith.constant dense<0.000000e+00> : vector<8x96xf32>
    %9 = tpu.matmul %7, %8, %cst_8 {dimension_numbers = #tpu.dot_dimension_numbers<[1], [0], [0], [1], [0, 0, 1, 1], [], []>} : vector<8x96xf32>, vector<96x96xf32>, vector<8x96xf32> -> vector<8x96xf32>
    %c0_9 = arith.constant 0 : index
    %c0_10 = arith.constant 0 : index
    %10 = vector.load %arg6[%c0_9, %c0_10] : memref<1x96xf32, #tpu.memory_space<vmem>>, vector<1x96xf32>
    %11 = vector.broadcast %10 : vector<1x96xf32> to vector<8x96xf32>
    %12 = arith.addf %9, %11 : vector<8x96xf32>
    %cst_11 = arith.constant 0.000000e+00 : f32
    %13 = vector.broadcast %cst_11 : f32 to vector<8x96xf32>
    %14 = arith.maximumf %12, %13 : vector<8x96xf32>
    %c0_12 = arith.constant 0 : index
    %c0_13 = arith.constant 0 : index
    %15 = vector.load %arg7[%c0_12, %c0_13] : memref<96x7xf32, #tpu.memory_space<vmem>>, vector<96x7xf32>
    %cst_14 = arith.constant dense<0.000000e+00> : vector<8x7xf32>
    %16 = tpu.matmul %14, %15, %cst_14 {dimension_numbers = #tpu.dot_dimension_numbers<[1], [0], [0], [1], [0, 0, 1, 1], [], []>} : vector<8x96xf32>, vector<96x7xf32>, vector<8x7xf32> -> vector<8x7xf32>
    %c0_15 = arith.constant 0 : index
    %c0_16 = arith.constant 0 : index
    %17 = vector.load %arg8[%c0_15, %c0_16] : memref<1x7xf32, #tpu.memory_space<vmem>>, vector<1x7xf32>
    %18 = vector.broadcast %17 : vector<1x7xf32> to vector<8x7xf32>
    %19 = arith.addf %16, %18 : vector<8x7xf32>
    %cst_17 = arith.constant dense<0.000000e+00> : vector<8xf32>
    %20 = vector.multi_reduction <add>, %19, %cst_17 [1] : vector<8x7xf32> to vector<8xf32>
    %21 = vector.shape_cast %20 : vector<8xf32> to vector<8x1xf32>
    %cst_18 = arith.constant 7.000000e+00 : f32
    %22 = vector.broadcast %cst_18 : f32 to vector<8x1xf32>
    %23 = arith.divf %21, %22 : vector<8x1xf32>
    %24 = vector.broadcast %23 : vector<8x1xf32> to vector<8x7xf32>
    %25 = arith.subf %19, %24 : vector<8x7xf32>
    %26 = arith.mulf %25, %25 : vector<8x7xf32>
    %cst_19 = arith.constant dense<0.000000e+00> : vector<8xf32>
    %27 = vector.multi_reduction <add>, %26, %cst_19 [1] : vector<8x7xf32> to vector<8xf32>
    %28 = vector.shape_cast %27 : vector<8xf32> to vector<8x1xf32>
    %cst_20 = arith.constant 7.000000e+00 : f32
    %29 = vector.broadcast %cst_20 : f32 to vector<8x1xf32>
    %30 = arith.divf %28, %29 : vector<8x1xf32>
    %31 = vector.broadcast %23 : vector<8x1xf32> to vector<8x7xf32>
    %32 = arith.subf %19, %31 : vector<8x7xf32>
    %cst_21 = arith.constant 9.99999974E-6 : f32
    %33 = vector.broadcast %cst_21 : f32 to vector<8x1xf32>
    %34 = arith.addf %30, %33 : vector<8x1xf32>
    %35 = math.rsqrt %34 : vector<8x1xf32>
    %36 = vector.broadcast %35 : vector<8x1xf32> to vector<8x7xf32>
    %37 = arith.mulf %32, %36 : vector<8x7xf32>
    %c0_22 = arith.constant 0 : index
    %c0_23 = arith.constant 0 : index
    %38 = vector.load %arg9[%c0_22, %c0_23] : memref<1x7xf32, #tpu.memory_space<vmem>>, vector<1x7xf32>
    %39 = vector.broadcast %38 : vector<1x7xf32> to vector<8x7xf32>
    %40 = arith.mulf %37, %39 : vector<8x7xf32>
    %c0_24 = arith.constant 0 : index
    %c0_25 = arith.constant 0 : index
    %41 = vector.load %arg10[%c0_24, %c0_25] : memref<1x7xf32, #tpu.memory_space<vmem>>, vector<1x7xf32>
    %42 = vector.broadcast %41 : vector<1x7xf32> to vector<8x7xf32>
    %43 = arith.addf %40, %42 : vector<8x7xf32>
    %cst_26 = arith.constant 0.000000e+00 : f32
    %44 = vector.broadcast %cst_26 : f32 to vector<8x7xf32>
    %45 = arith.maximumf %43, %44 : vector<8x7xf32>
    %c0_27 = arith.constant 0 : index
    %c0_28 = arith.constant 0 : index
    %46 = vector.load %arg2[%c0_27, %c0_28] : memref<8x7xf32, #tpu.memory_space<vmem>>, vector<8x7xf32>
    %47 = arith.addf %45, %46 : vector<8x7xf32>
    %c0_29 = arith.constant 0 : index
    %c0_30 = arith.constant 0 : index
    %48 = vector.load %arg11[%c0_29, %c0_30] : memref<7x256xf32, #tpu.memory_space<vmem>>, vector<7x256xf32>
    %cst_31 = arith.constant dense<0.000000e+00> : vector<8x256xf32>
    %49 = tpu.matmul %47, %48, %cst_31 {dimension_numbers = #tpu.dot_dimension_numbers<[1], [0], [0], [1], [0, 0, 1, 1], [], []>} : vector<8x7xf32>, vector<7x256xf32>, vector<8x256xf32> -> vector<8x256xf32>
    %c0_32 = arith.constant 0 : index
    %c0_33 = arith.constant 0 : index
    %50 = vector.load %arg12[%c0_32, %c0_33] : memref<1x256xf32, #tpu.memory_space<vmem>>, vector<1x256xf32>
    %51 = vector.broadcast %50 : vector<1x256xf32> to vector<8x256xf32>
    %52 = arith.addf %49, %51 : vector<8x256xf32>
    %53 = vector.extract_strided_slice %52 {offsets = [0, 0], sizes = [8, 128], strides = [1, 1]} : vector<8x256xf32> to vector<8x128xf32>
    %c0_34 = arith.constant 0 : index
    %c0_35 = arith.constant 0 : index
    %54 = vector.load %arg13[%c0_34, %c0_35] : memref<8x128xf32, #tpu.memory_space<vmem>>, vector<8x128xf32>
    tpu.vector_store %arg13[%c0_34, %c0_35], %53 {strides = array<i32>} : memref<8x128xf32, #tpu.memory_space<vmem>>, vector<8x128xf32>,
    %55 = vector.extract_strided_slice %52 {offsets = [0, 128], sizes = [8, 128], strides = [1, 1]} : vector<8x256xf32> to vector<8x128xf32>
    %cst_36 = arith.constant 2.000000e+01 : f32
    %56 = vector.broadcast %cst_36 : f32 to vector<8x128xf32>
    %57 = arith.cmpf ogt, %55, %56 : vector<8x128xf32>
    %cst_37 = arith.constant 2.000000e+01 : f32
    %58 = vector.broadcast %cst_37 : f32 to vector<8x128xf32>
    %59 = arith.minimumf %55, %58 : vector<8x128xf32>
    %60 = math.exp %59 : vector<8x128xf32>
    %61 = math.log1p %60 : vector<8x128xf32>
    %62 = arith.select %57, %55, %61 : vector<8x128xi1>, vector<8x128xf32>
    %c0_38 = arith.constant 0 : index
    %c0_39 = arith.constant 0 : index
    %63 = vector.load %arg14[%c0_38, %c0_39] : memref<8x128xf32, #tpu.memory_space<vmem>>, vector<8x128xf32>
    tpu.vector_store %arg14[%c0_38, %c0_39], %62 {strides = array<i32>} : memref<8x128xf32, #tpu.memory_space<vmem>>, vector<8x128xf32>,
    return
  }
  func.func @transform_0(%arg0: i32) -> (i32, i32) {
    %c0_i32 = arith.constant 0 : i32
    %c0_i32_0 = arith.constant 0 : i32
    return %arg0, %c0_i32 : i32, i32
  }
  func.func @transform_1(%arg0: i32) -> (i32, i32) {
    %c0_i32 = arith.constant 0 : i32
    %c0_i32_0 = arith.constant 0 : i32
    return %arg0, %c0_i32 : i32, i32
  }
  func.func @transform_2(%arg0: i32) -> (i32, i32) {
    %c0_i32 = arith.constant 0 : i32
    %c0_i32_0 = arith.constant 0 : i32
    %c0_i32_1 = arith.constant 0 : i32
    return %c0_i32, %c0_i32_0 : i32, i32
  }
  func.func @transform_3(%arg0: i32) -> (i32, i32) {
    %c0_i32 = arith.constant 0 : i32
    %c0_i32_0 = arith.constant 0 : i32
    %c0_i32_1 = arith.constant 0 : i32
    return %c0_i32, %c0_i32_0 : i32, i32
  }
  func.func @transform_4(%arg0: i32) -> (i32, i32) {
    %c0_i32 = arith.constant 0 : i32
    %c0_i32_0 = arith.constant 0 : i32
    %c0_i32_1 = arith.constant 0 : i32
    return %c0_i32, %c0_i32_0 : i32, i32
  }
  func.func @transform_5(%arg0: i32) -> (i32, i32) {
    %c0_i32 = arith.constant 0 : i32
    %c0_i32_0 = arith.constant 0 : i32
    %c0_i32_1 = arith.constant 0 : i32
    return %c0_i32, %c0_i32_0 : i32, i32
  }
  func.func @transform_6(%arg0: i32) -> (i32, i32) {
    %c0_i32 = arith.constant 0 : i32
    %c0_i32_0 = arith.constant 0 : i32
    %c0_i32_1 = arith.constant 0 : i32
    return %c0_i32, %c0_i32_0 : i32, i32
  }
  func.func @transform_7(%arg0: i32) -> (i32, i32) {
    %c0_i32 = arith.constant 0 : i32
    %c0_i32_0 = arith.constant 0 : i32
    %c0_i32_1 = arith.constant 0 : i32
    return %c0_i32, %c0_i32_0 : i32, i32
  }
  func.func @transform_8(%arg0: i32) -> (i32, i32) {
    %c0_i32 = arith.constant 0 : i32
    %c0_i32_0 = arith.constant 0 : i32
    %c0_i32_1 = arith.constant 0 : i32
    return %c0_i32, %c0_i32_0 : i32, i32
  }
  func.func @transform_9(%arg0: i32) -> (i32, i32) {
    %c0_i32 = arith.constant 0 : i32
    %c0_i32_0 = arith.constant 0 : i32
    %c0_i32_1 = arith.constant 0 : i32
    return %c0_i32, %c0_i32_0 : i32, i32
  }
  func.func @transform_10(%arg0: i32) -> (i32, i32) {
    %c0_i32 = arith.constant 0 : i32
    %c0_i32_0 = arith.constant 0 : i32
    %c0_i32_1 = arith.constant 0 : i32
    return %c0_i32, %c0_i32_0 : i32, i32
  }
  func.func @transform_11(%arg0: i32) -> (i32, i32) {
    %c0_i32 = arith.constant 0 : i32
    %c0_i32_0 = arith.constant 0 : i32
    %c0_i32_1 = arith.constant 0 : i32
    return %c0_i32, %c0_i32_0 : i32, i32
  }
  func.func @transform_12(%arg0: i32) -> (i32, i32) {
    %c0_i32 = arith.constant 0 : i32
    %c0_i32_0 = arith.constant 0 : i32
    return %arg0, %c0_i32 : i32, i32
  }
  func.func @transform_13(%arg0: i32) -> (i32, i32) {
    %c0_i32 = arith.constant 0 : i32
    %c0_i32_0 = arith.constant 0 : i32
    return %arg0, %c0_i32 : i32, i32
  }
}

</mosaic_0001>

<bundles_post_ra>
// kernel: tpu_custom_call.1
= control target key start
LH: loop header
LB: loop body
LE: loop exit
PB: predicated region body
PF: predicated region fallthrough
CT: control target
= control target key end

     0   :  { %s1308_s0 = inlined_call_operand.vmem [shape: f32[16,7], index: 0, kind: input, shape index: {}]   ;;  %s1309_s1 = inlined_call_operand.vmem [shape: f32[16,7], index: 1, kind: input, shape index: {}]   ;;  %s1310_s2 = inlined_call_operand.vmem [shape: f32[7,96], index: 2, kind: input, shape index: {}]   ;;  %s1311_s3 = inlined_call_operand.vmem [shape: f32[1,96], index: 3, kind: input, shape index: {}]   ;;  %s1312_s4 = inlined_call_operand.vmem [shape: f32[96,96], index: 4, kind: input, shape index: {}]   ;;  %s1313_s5 = inlined_call_operand.vmem [shape: f32[1,96], index: 5, kind: input, shape index: {}]   ;;  %s1314_s6 = inlined_call_operand.vmem [shape: f32[96,7], index: 6, kind: input, shape index: {}]   ;;  %s1315_s7 = inlined_call_operand.vmem [shape: f32[1,7], index: 7, kind: input, shape index: {}]   ;;  %s1316_s8 = inlined_call_operand.vmem [shape: f32[1,7], index: 8, kind: input, shape index: {}]   ;;  %s1317_s9 = inlined_call_operand.vmem [shape: f32[1,7], index: 9, kind: input, shape index: {}]   ;;  %s1318_s10 = inlined_call_operand.vmem [shape: f32[7,256], index: 10, kind: input, shape index: {}]   ;;  %s1319_s11 = inlined_call_operand.vmem [shape: f32[1,256], index: 11, kind: input, shape index: {}]   ;;  %s1320_s12 = inlined_call_operand.hbm [shape: f32[16,128], index: 12, kind: output, shape index: {0}]   ;;  %s1321_s13 = inlined_call_operand.hbm [shape: f32[16,128], index: 13, kind: output, shape index: {1}]  }
   0x1   :  { %1326 = sst [smem:[#allocation10_spill]] %s1308_s0 }
   0x2   :  { %1327 = sst [smem:[#allocation11_spill]] %s1310_s2 }
   0x3   :  { %19 = vsyncpa [#allocation3], 0 }
   0x4   :  { %21 = vsyncpa [#allocation3 + $0x1], 0 }
   0x5   :  { %22 = vsyncpa [#allocation5], 0 }
   0x6   :  { %24 = vsyncpa [#allocation5 + $0x1], 0  ;;  %s1080_s25 = smov 0   ;;  %s1082_s26 = smov 0  }
   0x7   :  { %s1084_s27 = smov 0   ;;  %s1086_s28 = smov 0  }
   0x8 LB: > { %1328 = sst [smem:[#allocation8_spill]] %s1003_s27  ;;  %s1101_s29 = sadd.s32 4294967295, %s1007_s28   ;;  %s1007_s28 = sphi %s1086_s28, %s1341_s28   ;;  %s1003_s27 = sphi %s1084_s27, %s1338_s27   ;;  %s999_s26 = sphi %s1082_s26, %s1340_s26   ;;  %s995_s25 = sphi %s1080_s25, %s1339_s25  }
   0x9   : > { %s833_s30 = sadd.s32 4294967294, %s1007_s28   ;;  %s1105_s14 = sadd.s32 1, %s1007_s28  }
   0xa   : > { %s299_s15 = sadd.s32 1, %s1003_s27  ;;  %s296_s16 = ssub.s32 %s1007_s28, %s1105_s14 }
   0xb   : > { %p309_p0 = scmp.ne.s32.totalorder %s1003_s27, %s999_s26  ;;  %p297_p1 = scmp.eq.s32.totalorder %s296_s16, 0 }
   0xc   : > { %p310_p2 = scmp.eq.s32.totalorder %s1101_s29, 1  ;;  %p315_p3 = scmp.ne.s32.totalorder %s999_s26, %s995_s25 }
   0xd   : > { %p316_p4 = scmp.eq.s32.totalorder %s833_s30, 1  ;;  %p836_p7 = scmp.ge.s32.totalorder %s1007_s28, 1 }
   0xe   : > { %s1116_s17 = scalar_select %p297_p1, %s1003_s27, %s299_s15  }
   0xf   : > { %p1118_p5 = por %p310_p2, %p309_p0  ;;  %p1122_p6 = por %p316_p4, %p315_p3 }
  0x10   : > { %1329 = sst [smem:[#allocation9_spill]] %s1116_s17  ;;  %p404_p8 = scmp.lt.s32.totalorder %s1007_s28, 3 }
  0x12   : > { %p405_p9 = pnand %p836_p7, %p404_p8 }
  0x13   : > { %s1332_s2 = sld [smem:[#allocation11_spill]] (!%p405_p9)  ;;  %p456_p10 = scmp.lt.s32.totalorder (!%p405_p9), %s1101_s29, 1 }
  0x14   : > { %408 = sbr.rel (%p405_p9) target bundleno = 851 (0x353), region = 68  ;;  %s1333_s0 = sld [smem:[#allocation10_spill]] (!%p405_p9) }
  0x15   : > { %s1325_s30 = sshll.u32 (!%p405_p9), %s1101_s29, 3 }
  0x19   : > { %v465_v0 = vld [vmem:[%s1332_s2] sm:$0x7f]  ;;  %vm474_vm0 = vcmask 1046528   ;;  %v510_v1 = vld [vmem:[%s1312_s4 + $0x58] sm:$0xff]  ;;  %v509_v2 = vld [vmem:[%s1312_s4 + $0x50] sm:$0xff]  ;;  %s1140_s15 = scalar_select %p456_p10, %s1101_s29, 1 }
  0x1a   : > { %841 = vmatpush.msk.msra.mxu0 %vm474_vm0, %v465_v0  ;;  %523 = vmatpush.msra.mxu1 %v510_v1  ;;  %v508_v3 = vld [vmem:[%s1312_s4 + $0x48] sm:$0xff]  ;;  %vm470_vm1 = vcmask 56320   ;;  %v507_v4 = vld [vmem:[%s1312_s4 + $0x40] sm:$0xff]  ;;  %v506_v6 = vld [vmem:[%s1312_s4 + $0x38] sm:$0xff]  ;;  %vm515_vm2 = vcmask 785408   ;;  %v1009_v38 = vmov 7.0  }
  0x1b   : > { %s1323_s21 = sshll.u32 %s1140_s15, 3  ;;  %v505_v7 = vld [vmem:[%s1312_s4 + $0x30] sm:$0xff]  ;;  %v504_v8 = vld [vmem:[%s1312_s4 + $0x28] sm:$0xff]  ;;  %v503_v9 = vld [vmem:[%s1312_s4 + $0x20] sm:$0xff]  ;;  %905 = vrcp.f32 %v1009_v38  ;;  %s1334_s23 = sshll.u32 %s1140_s15, 3 }
  0x1c   : > { %524 = vmatpush.msra.mxu1 %v509_v2  ;;  %s459_s24 = scalar_lea.vmem %s1333_s0, %s1323_s21  ;;  %v502_v10 = vld [vmem:[%s1312_s4 + $0x18] sm:$0xff]  ;;  %v501_v11 = vld [vmem:[%s1312_s4 + $0x10] sm:$0xff]  ;;  %v500_v12 = vld [vmem:[%s1312_s4 + $0x8] sm:$0xff]  ;;  %s463_s27 = scalar_lea.vmem %s1309_s1, %s1334_s23 }
  0x1d   : > { %v464_v5 = vld [vmem:[%s459_s24] sm:$0xff]  ;;  %v551_v14 = vld [vmem:[%s1314_s6 + $0x58] sm:$0xff]  ;;  %v550_v15 = vld [vmem:[%s1314_s6 + $0x50] sm:$0xff]  ;;  %s1251_s15 = sand.u32 1, %s999_s26   ;;  %s710_s23 = scalar_lea.hbm %s1320_s12, %s1325_s30 }
  0x1e   : > { %525 = vmatpush.msra.mxu1 %v508_v3  ;;  %842 = vmatmul.msk.f32.vlgmr.msra.gmra.mxu0 %vm470_vm1, %v464_v5  ;;  %v499_v13 = vld [vmem:[%s1312_s4] sm:$0xff]  ;;  %v549_v16 = vld [vmem:[%s1314_s6 + $0x48] sm:$0xff]  ;;  %v547_v18 = vld [vmem:[%s1314_s6 + $0x38] sm:$0xff]  ;;  %s1324_s16 = sshll.u32 %s1251_s15, 3  ;;  %s695_s21 = scalar_lea.sflag [#allocation3], %s1251_s15 }
  0x1f   : > { %563 = vmatpush.msra.mxu2 %v551_v14  ;;  %v548_v17 = vld [vmem:[%s1314_s6 + $0x40] sm:$0xff]  ;;  %v546_v19 = vld [vmem:[%s1314_s6 + $0x30] sm:$0xff]  ;;  %v545_v20 = vld [vmem:[%s1314_s6 + $0x28] sm:$0xff]  ;;  %s448_s2 = scalar_lea.vmem [#allocation2], %s1324_s16  ;;  %s933_s16 = scalar_lea.hbm %s1320_s12, 16 }
  0x20   : > { %526 = vmatpush.msra.mxu1 %v507_v4  ;;  %v544_v21 = vld [vmem:[%s1314_s6 + $0x20] sm:$0xff]  ;;  %v543_v22 = vld [vmem:[%s1314_s6 + $0x18] sm:$0xff]  ;;  %v542_v27 = vld [vmem:[%s1314_s6 + $0x10] sm:$0xff]  ;;  %s712_s17 = sshll.u32 %s448_s2, 4  ;;  %s713_s17 = int_to_ptr.vmem [resolvable:$true] %s712_s17 }
  0x21   : > { %564 = vmatpush.msra.mxu2 %v550_v15  ;;  %v900_v23 = vld [vmem:[%s1311_s3] ss:$0 sm:$0xff]  ;;  %v541_v28 = vld [vmem:[%s1314_s6 + $0x8] sm:$0xff]  ;;  %v906_v39 = vpop.eup %905 }
  0x22   : > { %527 = vmatpush.msra.mxu1 %v506_v6  ;;  %v540_v29 = vld [vmem:[%s1314_s6] sm:$0xff]  ;;  %v583_v40 = vmul.f32 7.0, %v906_v39  ;;  %vm587_vm3 = vweird.f32 %v906_v39  ;;  %v622_v50 = vld [vmem:[%s1318_s10 + $0x8] sm:$0x7f] }
  0x23   : > { %565 = vmatpush.msra.mxu2 %v549_v16  ;;  %v901_v30 = vld [vmem:[%s1313_s5] ss:$0 sm:$0xff]  ;;  %847 = vmatpush.msk.msrb.mxu0 %vm474_vm0, %v622_v50 }
  0x24   : > { %528 = vmatpush.msra.mxu1 %v505_v7  ;;  %v902_v34 = vld [vmem:[%s1315_s7] ss:$0 sm:$0xff]  ;;  %v584_v41 = vsub.f32 1.0, %v583_v40 }
  0x25   : > { %566 = vmatpush.msra.mxu2 %v548_v17  ;;  %v621_v51 = vld [vmem:[%s1318_s10] sm:$0x7f] }
  0x26   : > { %529 = vmatpush.msra.mxu1 %v504_v8  ;;  %v585_v42 = vmul.f32 %v906_v39, %v584_v41  ;;  %845 = vmatpush.msk.msra.mxu3 %vm474_vm0, %v621_v51  ;;  %v903_v61 = vld [vmem:[%s1316_s8] ss:$0 sm:$0xff] }
  0x27   : > { %567 = vmatpush.msra.mxu2 %v547_v18  ;;  %v904_v0 = vld [vmem:[%s1317_s9] ss:$0 sm:$0xff] }
  0x28   : > { %530 = vmatpush.msra.mxu1 %v503_v9  ;;  %v586_v43 = vadd.f32 %v906_v39, %v585_v42  ;;  %v619_v3 = vld [vmem:[%s463_s27] sm:$0xff]  ;;  %s714_s27 = sshll.u32 %s710_s23, 4  ;;  %s715_s27 = int_to_ptr.hbm [resolvable:$true] %s714_s27 }
  0x29   : > { %568 = vmatpush.msra.mxu2 %v546_v19  ;;  %v623_v6 = vld [vmem:[%s1319_s11] sm:$0x3]  ;;  %s927_s24 = sshra.s32 %s715_s27, 4  ;;  %s928_s24 = int_to_ptr.hbm [resolvable:$true] %s927_s24 }
  0x2a   : > { %531 = vmatpush.msra.mxu1 %v502_v10  ;;  %v588_v44 = vsel %vm587_vm3, %v906_v39, %v586_v43  ;;  %v626_v7 = vperm.slane %v623_v6, 1  ;;  %s929_s0 = scalar_lea.hbm %s928_s24, 8  ;;  %p934_p0 = scmp.lt.s32.totalorder %s928_s24, %s1320_s12 }
  0x2b   : > { %569 = vmatpush.msra.mxu2 %v545_v20  ;;  %p930_p11 = scmp.ne.s32.totalorder %s928_s24, %s929_s0  ;;  %p935_p1 = scmp.lt.s32.totalorder %s933_s16, %s929_s0 }
  0x2c   : > { %532 = vmatpush.msra.mxu1 %v501_v11  ;;  %v625_v11 = vperm.slane %v623_v6, 0 }
  0x2d   : > { %570 = vmatpush.msra.mxu2 %v544_v21  ;;  %p931_p12 = pnand %p930_p11, %p1118_p5  ;;  %p936_p2 = por %p935_p1, %p934_p0 }
  0x2e   : > { %533 = vmatpush.msra.mxu1 %v500_v12 }
  0x2f   : > { %571 = vmatpush.msra.mxu2 %v543_v22  ;;  %p932_p13 = pneg %p931_p12 }
  0x30   : > { %534 = vmatpush.msra.mxu1 %v499_v13 }
  0x31   : > { %572 = vmatpush.msra.mxu2 %v542_v27  ;;  %p937_p3 = pnand %p936_p2, %p932_p13 }
  0x33   : > { %573 = vmatpush.msra.mxu2 %v541_v28 }
  0x35   : > { %574 = vmatpush.msra.mxu2 %v540_v29 }
  0x9b   : > { %v495_v24 = vpop.f32.mrf.mxu0 }
  0x9c   : > { %v496_v25 = vadd.f32 %v900_v23, %v495_v24 }
  0x9e   : > { %v498_v26 = vmax.f32 %v496_v25, 0.0 }
  0xa0   : > { %843 = vmatmul.msk.f32.vlgmr.msra.gmra.mxu1 %vm515_vm2, %v498_v26 }
 0x11d   : > { %v536_v31 = vpop.f32.mrf.mxu1 }
 0x11e   : > { %v537_v32 = vadd.f32 %v901_v30, %v536_v31 }
 0x120   : > { %v539_v33 = vmax.f32 %v537_v32, 0.0 }
 0x122   : > { %844 = vmatmul.msk.f32.vlgmr.msra.gmra.mxu2 %vm515_vm2, %v539_v33 }
 0x1a5   : > { %v576_v35 = vpop.f32.mrf.mxu2 }
 0x1a6   : > { %v577_v36 = vadd.f32 %v902_v34, %v576_v35 }
 0x1a8   : > { %v579_v37 = vsel %vm470_vm1, %v577_v36, 0.0 }
 0x1a9   : > { %580 = vadd.xlane.f32.xlu0 %v579_v37 }
 0x21c   : > { %v581_v45 = vpop.xlane.xlu0 %580 }
 0x21d   : > { %v589_v46 = vmul.f32 %v588_v44, %v581_v45 }
 0x21f   : > { %v590_v47 = vsub.f32 %v577_v36, %v589_v46 }
 0x221   : > { %v591_v48 = vmul.f32 %v590_v47, %v590_v47 }
 0x223   : > { %v592_v49 = vsel %vm470_vm1, %v591_v48, 0.0 }
 0x224   : > { %593 = vadd.xlane.f32.xlu0 %v592_v49 }
 0x297   : > { %v594_v52 = vpop.xlane.xlu0 %593 }
 0x298   : > { %v595_v53 = vmul.f32 %v594_v52, %v588_v44 }
 0x29a   : > { %v596_v54 = vadd.f32 1e-05, %v595_v53 }
 0x29c   : > { %907 = vrsqrt.f32 %v596_v54  ;;  %vm603_vm5 = vweird.f32 %v596_v54 }
 0x2a2   : > { %v908_v55 = vpop.eup %907 }
 0x2a3   : > { %v598_v56 = vmul.f32 %v908_v55, %v596_v54  ;;  %vm604_vm4 = vweird.f32 %v908_v55 }
 0x2a4   : > { %vm605_vm6 = vmor %vm603_vm5, %vm604_vm4 }
 0x2a5   : > { %v599_v57 = vmul.f32 %v908_v55, %v598_v56 }
 0x2a7   : > { %v600_v58 = vmul.f32 0.5, %v599_v57 }
 0x2a9   : > { %v601_v59 = vsub.f32 1.5, %v600_v58 }
 0x2ab   : > { %v602_v60 = vmul.f32 %v908_v55, %v601_v59 }
 0x2ad   : > { %v606_v62 = vsel %vm605_vm6, %v908_v55, %v602_v60 }
 0x2ae   : > { %v607_v63 = vmul.f32 %v606_v62, %v590_v47 }
 0x2b0   : > { %v612_v1 = vmul.f32 %v903_v61, %v607_v63 }
 0x2b2   : > { %v617_v2 = vadd.f32 %v904_v0, %v612_v1 }
 0x2b4   : > { %v618_v4 = vmax.f32 %v617_v2, 0.0 }
 0x2b6   : > { %v620_v5 = vadd.f32 %v619_v3, %v618_v4 }
 0x2b8   : > { %846 = vmatmul.msk.f32.vlgmr.msra.gmra.mxu3 %vm470_vm1, %v620_v5  ;;  %848 = vmatmul.msk.f32.vlgmr.msrb.gmra.mxu0 %vm470_vm1, %v620_v5 }
 0x335   : > { %v675_v8 = vpop.f32.mrf.mxu0 }
 0x336   : > { %v676_v9 = vadd.f32 %v675_v8, %v626_v7 }
 0x338   : > { %v680_v10 = vmin.f32 %v676_v9, 20.0 }
 0x33a   : > { %v681_v12 = vmul.f32 1.442695, %v680_v10 }
 0x33b   : > { %v655_v13 = vpop.f32.mrf.mxu3 }
 0x33c   : > { %909 = vpow2.f32 %v681_v12  ;;  %v656_v14 = vadd.f32 %v655_v13, %v625_v11 }
 0x33e   : > { %678 = vst [vmem:[%s448_s2] sm:$0xff] %v656_v14 }
 0x33f   : > { %940 = shalt.err (!%p937_p3)
}
 0x340   : > { %855 = dma.vmem_to_hbm [thread:$0]  (%p1118_p5), %s713_s17, 128, %s715_s27, %s695_s21   ;;  %vm679_vm8 = vcmp.gt.f32.partialorder %v676_v9, 20.0 }
 0x341   : > { %s1335_s2 = sshll.u32 %s1101_s29, 3  ;;  %s1336_s0 = sshll.u32 %s1251_s15, 3 }
 0x342   : > { %v910_v15 = vpop.eup %909  ;;  %s724_s30 = scalar_lea.hbm %s1321_s13, %s1335_s2  ;;  %s455_s16 = scalar_lea.vmem [#allocation4], %s1336_s0 }
 0x343   : > { %v683_v16 = vadd.f32 1.0, %v910_v15  ;;  %v686_v17 = vmul.f32 -0.5, %v910_v15  ;;  %v689_v19 = vand.u32 2147483647, %v910_v15  ;;  %s726_s24 = sshll.u32 %s455_s16, 4  ;;  %s728_s23 = sshll.u32 %s724_s30, 4  ;;  %s727_s24 = int_to_ptr.vmem [resolvable:$true] %s726_s24  ;;  %s729_s23 = int_to_ptr.hbm [resolvable:$true] %s728_s23 }
 0x344   : > { %s700_s29 = scalar_lea.sflag [#allocation5], %s1251_s15  ;;  %s955_s17 = sshra.s32 %s729_s23, 4  ;;  %s956_s17 = int_to_ptr.hbm [resolvable:$true] %s955_s17 }
 0x345   : > { %911 = vlog2.f32 %v683_v16  ;;  %v687_v18 = vadd.f32 1.0, %v686_v17  ;;  %vm690_vm7 = vcmp.lt.f32.partialorder %v689_v19, 0.0004427343  ;;  %s957_s27 = scalar_lea.hbm %s956_s17, 8  ;;  %s961_s20 = scalar_lea.hbm %s1321_s13, 16 }
 0x346   : > { %p958_p4 = scmp.ne.s32.totalorder %s956_s17, %s957_s27  ;;  %p962_p9 = scmp.lt.s32.totalorder %s956_s17, %s1321_s13 }
 0x347   : > { %v688_v22 = vmul.f32 %v910_v15, %v687_v18  ;;  %p963_p10 = scmp.lt.s32.totalorder %s961_s20, %s957_s27 }
 0x348   : > { %p959_p7 = pnand %p958_p4, %p1118_p5 }
 0x349   : > { %p964_p11 = por %p963_p10, %p962_p9 }
 0x34a   : > { %p960_p8 = pneg %p959_p7 }
 0x34b   : > { %v912_v20 = vpop.eup %911 }
 0x34c   : > { %v685_v21 = vmul.f32 0.6931472, %v912_v20  ;;  %p965_p12 = pnand %p964_p11, %p960_p8 }
 0x34e   : > { %v691_v23 = vsel %vm690_vm7, %v688_v22, %v685_v21 }
 0x34f   : > { %v692_v24 = vsel %vm679_vm8, %v676_v9, %v691_v23 }
 0x350   : > { %693 = vst [vmem:[%s455_s16] sm:$0xff] %v692_v24 }
 0x351   : > { %968 = shalt.err (!%p965_p12)
}
 0x352   : > { %856 = dma.vmem_to_hbm [thread:$0]  (%p1118_p5), %s727_s24, 128, %s729_s23, %s700_s29  }
 0x353 PF: > { %p866_p13 = scmp.ge.s32.totalorder %s1007_s28, 2  ;;  %s740_s15 = sand.u32 1, %s995_s25  }
 0x354   : > { %s741_s0 = scalar_lea.sflag [#allocation3], %s740_s15 }
 0x355   : > { %p860_p0 = pnand %p866_p13, %p1122_p6 }
 0x357   : > { %p861_p1 = pneg %p860_p0 }
 0x359   : > { %986 = dma.done.wait (%p861_p1), %s741_s0, 128  }
 0x35a   : > { %988 = vsyncadd (%p861_p1), %s741_s0, 4294967168  ;;  %s751_s16 = scalar_lea.sflag [#allocation5], %s740_s15 }
 0x35b   : > { %990 = dma.done.wait (%p861_p1), %s751_s16, 128  }
 0x35c   : > { %992 = vsyncadd (%p861_p1), %s751_s16, 4294967168  ;;  %s1337_s17 = sld [smem:[#allocation8_spill]]  ;;  %p27_p5 = scmp.ge.s32.totalorder %s1105_s14, 4  }
 0x35d   : > { %s1338_s27 = sld [smem:[#allocation9_spill]]  ;;  %s1339_s25 = smov %s999_s26 }
 0x35e   : > { %s1341_s28 = smov %s1105_s14  ;;  %29 = sbr.rel (!%p27_p5) target bundleno = 8 (0x8), region = 123 }
 0x362   : > { %s1340_s26 = smov %s1337_s17 }
 0x363   :  { %757 = vsyncpa [#allocation3], 1 }
 0x364   :  { %759 = vsyncpa [#allocation3 + $0x1], 1 }
 0x365   :  { %760 = vsyncpa [#allocation5], 1 }
 0x366   :  { %762 = vsyncpa [#allocation5 + $0x1], 1 }

</bundles_post_ra>
